<compile_context>
chip_gen: v6e
topology: v6e:2x2x1
jax: 0.10.0
libtpu: 0.0.40
codegen_flags: <defaults>
</compile_context>

<pallas_src>
import functools

import jax
import jax.numpy as jnp
from jax.experimental import pallas as pl
from jax.experimental.pallas import tpu as pltpu


def _round_up(a: int, b: int) -> int:
    return ((a + b - 1) // b) * b


def _vmem_capacity_bytes() -> int:
    try:
        return int(pltpu.get_tpu_info().vmem_capacity_bytes)
    except Exception:
        return 128 * 1024 * 1024          # conservative fallback


def ffn_kernel(x_ref, w1_ref, b1_ref, w2_ref, b2_ref, o_ref, acc_ref):
    # x_ref : (tm, d_model_p)      native x dtype (cast per tile below)
    # w1_ref: (d_model_p, tf)      compute dtype (bf16 or f32)
    # b1_ref: (1, tf)              f32
    # w2_ref: (tf, d_model_p)      compute dtype
    # b2_ref: (1, d_model_p)       f32
    # o_ref : (tm, d_model_p)      x dtype
    # acc_ref: (tm, d_model_p)     f32 scratch, lives across the d_ff grid axis
    k = pl.program_id(1)
    cdt = w1_ref.dtype

    @pl.when(k == 0)
    def _():
        # Seed the accumulator with the fc_2 bias: saves a full-tile add later.
        acc_ref[...] = jnp.broadcast_to(b2_ref[...], acc_ref.shape)

    # First matmul: full K = d_model, output columns tiled over d_ff.
    x = x_ref[...].astype(cdt)                      # per-tile cast, free under MXU
    h = jnp.dot(x, w1_ref[...], preferred_element_type=jnp.float32)
    h = jnp.maximum(h + b1_ref[...], 0.0)           # bias + ReLU in f32
    # TODO(synk): training-mode dropout would build a keep-mask here with
    # pltpu.prng_seed / pltpu.prng_random_bits; eval mode is identity.

    # Second matmul: accumulate this d_ff-tile's contribution.
    acc_ref[...] += jnp.dot(h.astype(cdt), w2_ref[...],
                            preferred_element_type=jnp.float32)

    @pl.when(k == pl.num_programs(1) - 1)
    def _():
        o_ref[...] = acc_ref[...].astype(o_ref.dtype)


def prepare_ffn_params(w1, b1, w2, b2, *, compute_dtype=jnp.bfloat16):
    """Pad + cast the FFN parameters once (hoisted out of the per-call path).

    w1: (d_model, d_ff), b1: (d_ff,), w2: (d_ff, d_model), b2: (d_model,).
    Weights are stored (in, out) so the kernel computes x @ W + b.
    """
    d_model, d_ff = w1.shape
    d_model_p = _round_up(d_model, 128)
    d_ff_p = _round_up(d_ff, 128)

    # VMEM limit tuned per generation via trace-time HW query.
    vmem_cap = _vmem_capacity_bytes()
    vmem_limit = min(int(vmem_cap * 0.85), 100 * 1024 * 1024)
    budget = int(vmem_limit * 0.9)

    c_itemsize = jnp.dtype(compute_dtype).itemsize
    # Weight-resident fast path: both (double-buffered) weight matrices must
    # leave at least half the budget for activation / accumulator tiles.
    resident_weight_bytes = 2 * 2 * d_model_p * d_ff_p * c_itemsize
    if resident_weight_bytes <= budget // 2:
        tile_ff = d_ff_p                       # weights DMA'd once for the call
    else:
        tile_ff = 512                          # stream weights in 512-wide tiles
        d_ff_p = _round_up(d_ff_p, tile_ff)    # pad up rather than shrink tile

    w1_p = jnp.pad(w1, ((0, d_model_p - d_model), (0, d_ff_p - d_ff))).astype(compute_dtype)
    w2_p = jnp.pad(w2, ((0, d_ff_p - d_ff), (0, d_model_p - d_model))).astype(compute_dtype)
    b1_p = jnp.pad(b1, (0, d_ff_p - d_ff)).reshape(1, d_ff_p).astype(jnp.float32)
    b2_p = jnp.pad(b2, (0, d_model_p - d_model)).reshape(1, d_model_p).astype(jnp.float32)

    return dict(w1=w1_p, b1=b1_p, w2=w2_p, b2=b2_p,
                tile_ff=tile_ff, vmem_limit=vmem_limit)


def _pick_tile_m(M, d_model_p, tile_ff, x_itemsize, c_itemsize, vmem_limit):
    budget = int(vmem_limit * 0.9)
    weight_bytes = 2 * 2 * d_model_p * tile_ff * c_itemsize   # W1+W2 tiles, dbl-buffered
    bias_bytes = 2 * (tile_ff + d_model_p) * 4
    fixed = weight_bytes + bias_bytes
    per_row = (2 * d_model_p * x_itemsize     # x tile (double-buffered, native dtype)
               + 2 * d_model_p * x_itemsize   # out tile (double-buffered)
               + 4 * d_model_p                # f32 accumulator scratch
               + 4 * tile_ff)                 # f32 h intermediate
    avail = max(budget - fixed, per_row)
    tile_m = min(1024, avail // per_row)
    if M <= tile_m:
        return max(_round_up(M, 8), 8)        # single row tile covers everything
    if M > 256:                               # keep >=2 row tiles for v7x's 2 TCs
        tile_m = min(tile_m, _round_up((M + 1) // 2, 128))
    return max(128, (tile_m // 128) * 128)


@functools.partial(jax.jit, static_argnames=("tile_ff", "vmem_limit", "tile_m"))
def _ffn_call(x, w1_p, b1_p, w2_p, b2_p, *, tile_ff, vmem_limit, tile_m=None):
    batch, seq, d_model = x.shape
    M = batch * seq
    d_model_p, d_ff_p = w1_p.shape
    c_itemsize = jnp.dtype(w1_p.dtype).itemsize
    x_itemsize = jnp.dtype(x.dtype).itemsize

    if tile_m is None:
        tile_m = _pick_tile_m(M, d_model_p, tile_ff, x_itemsize, c_itemsize, vmem_limit)
    M_p = _round_up(M, tile_m)

    # Pad activations only (weights were prepared once); keep native dtype —
    # the kernel casts per tile, avoiding a separate full-array cast pass.
    x2d = jnp.pad(x.reshape(M, d_model), ((0, M_p - M), (0, d_model_p - d_model)))

    grid = (M_p // tile_m, d_ff_p // tile_ff)
    n_row_tiles = grid[0]
    weight_bytes = (w1_p.size + w2_p.size) * c_itemsize
    weight_passes = 1 if tile_ff == d_ff_p else n_row_tiles   # resident => one pass
    cost = pl.CostEstimate(
        flops=4 * M_p * d_model_p * d_ff_p,
        transcendentals=0,
        bytes_accessed=int(x2d.size * x_itemsize
                           + weight_passes * weight_bytes
                           + (b1_p.size + b2_p.size) * 4
                           + M_p * d_model_p * x_itemsize),
    )

    out2d = pl.pallas_call(
        ffn_kernel,
        out_shape=jax.ShapeDtypeStruct((M_p, d_model_p), x.dtype),
        grid_spec=pltpu.PrefetchScalarGridSpec(
            num_scalar_prefetch=0,
            grid=grid,
            in_specs=[
                pl.BlockSpec((tile_m, d_model_p), lambda i, k: (i, 0)),   # x row tile
                pl.BlockSpec((d_model_p, tile_ff), lambda i, k: (0, k)),  # W1 col tile
                pl.BlockSpec((1, tile_ff), lambda i, k: (0, k)),          # b1 tile
                pl.BlockSpec((tile_ff, d_model_p), lambda i, k: (k, 0)),  # W2 row tile
                pl.BlockSpec((1, d_model_p), lambda i, k: (0, 0)),        # b2
            ],
            out_specs=pl.BlockSpec((tile_m, d_model_p), lambda i, k: (i, 0)),
            scratch_shapes=[pltpu.VMEM((tile_m, d_model_p), jnp.float32)],
        ),
        compiler_params=pltpu.CompilerParams(
            dimension_semantics=("parallel", "arbitrary"),
            vmem_limit_bytes=vmem_limit,
        ),
        cost_estimate=cost,
    )(x2d, w1_p, b1_p, w2_p, b2_p)

    return out2d[:M, :d_model].reshape(batch, seq, d_model)


def positionwise_feedforward(x, params, *, tile_m=None):
    """x: (batch, seq, d_model); params from prepare_ffn_params."""
    return _ffn_call(x, params["w1"], params["b1"], params["w2"], params["b2"],
                     tile_ff=params["tile_ff"], vmem_limit=params["vmem_limit"],
                     tile_m=tile_m)


if __name__ == "__main__":
    # Small config consistent with the module: d_model=32, d_ff=64, dropout=0.1
    batch, seq, d_model, d_ff = 2, 8, 32, 64

    key = jax.random.PRNGKey(0)
    kx, kw1, kb1, kw2, kb2 = jax.random.split(key, 5)

    x = jax.random.normal(kx, (batch, seq, d_model), dtype=jnp.float32)
    # PyTorch Linear weight is (out, in); we keep the transposed (in, out)
    # layout so the kernel computes x @ W + b.
    w1 = jax.random.normal(kw1, (d_model, d_ff), dtype=jnp.float32) * 0.05
    b1 = jax.random.normal(kb1, (d_ff,), dtype=jnp.float32) * 0.05
    w2 = jax.random.normal(kw2, (d_ff, d_model), dtype=jnp.float32) * 0.05
    b2 = jax.random.normal(kb2, (d_model,), dtype=jnp.float32) * 0.05

    # Pure-JAX reference (eval-mode dropout == identity).
    ref = (jnp.maximum(x.reshape(-1, d_model) @ w1 + b1, 0.0) @ w2 + b2)
    ref = ref.reshape(batch, seq, d_model)

    # f32 MXU inputs: tight tolerance check.
    params_f32 = prepare_ffn_params(w1, b1, w2, b2, compute_dtype=jnp.float32)
    out_f32 = jax.block_until_ready(positionwise_feedforward(x, params_f32))
    assert out_f32.shape == (batch, seq, d_model)
    assert jnp.allclose(out_f32, ref, atol=1e-5, rtol=1e-5)

    # Default bf16 MXU inputs (f32 accumulation): looser tolerance.
    params_bf16 = prepare_ffn_params(w1, b1, w2, b2)
    out_bf16 = jax.block_until_ready(positionwise_feedforward(x, params_bf16))
    assert out_bf16.shape == (batch, seq, d_model)
    assert jnp.allclose(out_bf16, ref, atol=2e-2, rtol=2e-2)

    print("KERNEL_OK")
</pallas_src>

<mosaic_0001>
module attributes {stable_mosaic.version = 11 : i64} {
  func.func @ffn_kernel(%arg0: i32, %arg1: i32, %arg2: memref<16x128xf32, #tpu.memory_space<vmem>>, %arg3: memref<128x128xf32, #tpu.memory_space<vmem>>, %arg4: memref<1x128xf32, #tpu.memory_space<vmem>>, %arg5: memref<128x128xf32, #tpu.memory_space<vmem>>, %arg6: memref<1x128xf32, #tpu.memory_space<vmem>>, %arg7: memref<16x128xf32, #tpu.memory_space<vmem>>, %arg8: memref<16x128xf32, #tpu.memory_space<vmem>>) attributes {dimension_semantics = [#tpu.dimension_semantics<parallel>, #tpu.dimension_semantics<arbitrary>], iteration_bounds = array<i64: 1, 1>, scalar_prefetch = 0 : i64, scratch_operands = 1 : i64, tpu.core_type = #tpu.core_type<tc>, window_params = [{transform_indices = @transform_0, window_bounds = array<i64: 16, 128>}, {transform_indices = @transform_1, window_bounds = array<i64: 128, 128>}, {transform_indices = @transform_2, window_bounds = array<i64: 1, 128>}, {transform_indices = @transform_3, window_bounds = array<i64: 128, 128>}, {pipeline_mode = #tpu.pipeline_mode<synchronous>, transform_indices = @transform_4, window_bounds = array<i64: 1, 128>}, {transform_indices = @transform_5, window_bounds = array<i64: 16, 128>}]} {
    %c0_i32 = arith.constant 0 : i32
    %0 = arith.cmpi eq, %arg1, %c0_i32 : i32
    %1 = arith.extui %0 : i1 to i32
    %c0_i32_0 = arith.constant 0 : i32
    %2 = arith.cmpi ne, %1, %c0_i32_0 : i32
    scf.if %2 {
      %c0_16 = arith.constant 0 : index
      %c0_17 = arith.constant 0 : index
      %19 = vector.load %arg6[%c0_16, %c0_17] : memref<1x128xf32, #tpu.memory_space<vmem>>, vector<1x128xf32>
      %20 = vector.shape_cast %19 : vector<1x128xf32> to vector<1x128xf32>
      %21 = vector.broadcast %20 : vector<1x128xf32> to vector<16x128xf32>
      %c0_18 = arith.constant 0 : index
      %c0_19 = arith.constant 0 : index
      %22 = vector.load %arg8[%c0_18, %c0_19] : memref<16x128xf32, #tpu.memory_space<vmem>>, vector<16x128xf32>
      tpu.vector_store %arg8[%c0_18, %c0_19], %21 {strides = array<i32>} : memref<16x128xf32, #tpu.memory_space<vmem>>, vector<16x128xf32>,
    } else {
    }
    %c0 = arith.constant 0 : index
    %c0_1 = arith.constant 0 : index
    %3 = vector.load %arg2[%c0, %c0_1] : memref<16x128xf32, #tpu.memory_space<vmem>>, vector<16x128xf32>
    %c0_2 = arith.constant 0 : index
    %c0_3 = arith.constant 0 : index
    %4 = vector.load %arg3[%c0_2, %c0_3] : memref<128x128xf32, #tpu.memory_space<vmem>>, vector<128x128xf32>
    %cst = arith.constant dense<0.000000e+00> : vector<16x128xf32>
    %5 = tpu.matmul %3, %4, %cst {dimension_numbers = #tpu.dot_dimension_numbers<[1], [0], [0], [1], [0, 0, 1, 1], [], []>} : vector<16x128xf32>, vector<128x128xf32>, vector<16x128xf32> -> vector<16x128xf32>
    %c0_4 = arith.constant 0 : index
    %c0_5 = arith.constant 0 : index
    %6 = vector.load %arg4[%c0_4, %c0_5] : memref<1x128xf32, #tpu.memory_space<vmem>>, vector<1x128xf32>
    %7 = vector.broadcast %6 : vector<1x128xf32> to vector<16x128xf32>
    %8 = arith.addf %5, %7 : vector<16x128xf32>
    %cst_6 = arith.constant 0.000000e+00 : f32
    %9 = vector.broadcast %cst_6 : f32 to vector<16x128xf32>
    %10 = arith.maximumf %8, %9 : vector<16x128xf32>
    %c0_7 = arith.constant 0 : index
    %c0_8 = arith.constant 0 : index
    %11 = vector.load %arg8[%c0_7, %c0_8] : memref<16x128xf32, #tpu.memory_space<vmem>>, vector<16x128xf32>
    %c0_9 = arith.constant 0 : index
    %c0_10 = arith.constant 0 : index
    %12 = vector.load %arg5[%c0_9, %c0_10] : memref<128x128xf32, #tpu.memory_space<vmem>>, vector<128x128xf32>
    %cst_11 = arith.constant dense<0.000000e+00> : vector<16x128xf32>
    %13 = tpu.matmul %10, %12, %cst_11 {dimension_numbers = #tpu.dot_dimension_numbers<[1], [0], [0], [1], [0, 0, 1, 1], [], []>} : vector<16x128xf32>, vector<128x128xf32>, vector<16x128xf32> -> vector<16x128xf32>
    %14 = arith.addf %11, %13 : vector<16x128xf32>
    %c0_12 = arith.constant 0 : index
    %c0_13 = arith.constant 0 : index
    %15 = vector.load %arg8[%c0_12, %c0_13] : memref<16x128xf32, #tpu.memory_space<vmem>>, vector<16x128xf32>
    tpu.vector_store %arg8[%c0_12, %c0_13], %14 {strides = array<i32>} : memref<16x128xf32, #tpu.memory_space<vmem>>, vector<16x128xf32>,
    %c0_i32_14 = arith.constant 0 : i32
    %16 = arith.cmpi eq, %arg1, %c0_i32_14 : i32
    %17 = arith.extui %16 : i1 to i32
    %c0_i32_15 = arith.constant 0 : i32
    %18 = arith.cmpi ne, %17, %c0_i32_15 : i32
    scf.if %18 {
      %c0_16 = arith.constant 0 : index
      %c0_17 = arith.constant 0 : index
      %19 = vector.load %arg8[%c0_16, %c0_17] : memref<16x128xf32, #tpu.memory_space<vmem>>, vector<16x128xf32>
      %c0_18 = arith.constant 0 : index
      %c0_19 = arith.constant 0 : index
      %20 = vector.load %arg7[%c0_18, %c0_19] : memref<16x128xf32, #tpu.memory_space<vmem>>, vector<16x128xf32>
      tpu.vector_store %arg7[%c0_18, %c0_19], %19 {strides = array<i32>} : memref<16x128xf32, #tpu.memory_space<vmem>>, vector<16x128xf32>,
    } else {
    }
    return
  }
  func.func @transform_0(%arg0: i32, %arg1: i32) -> (i32, i32) {
    %c0_i32 = arith.constant 0 : i32
    %c0_i32_0 = arith.constant 0 : i32
    return %arg0, %c0_i32 : i32, i32
  }
  func.func @transform_1(%arg0: i32, %arg1: i32) -> (i32, i32) {
    %c0_i32 = arith.constant 0 : i32
    %c0_i32_0 = arith.constant 0 : i32
    return %c0_i32, %arg1 : i32, i32
  }
  func.func @transform_2(%arg0: i32, %arg1: i32) -> (i32, i32) {
    %c0_i32 = arith.constant 0 : i32
    %c0_i32_0 = arith.constant 0 : i32
    return %c0_i32, %arg1 : i32, i32
  }
  func.func @transform_3(%arg0: i32, %arg1: i32) -> (i32, i32) {
    %c0_i32 = arith.constant 0 : i32
    %c0_i32_0 = arith.constant 0 : i32
    return %arg1, %c0_i32 : i32, i32
  }
  func.func @transform_4(%arg0: i32, %arg1: i32) -> (i32, i32) {
    %c0_i32 = arith.constant 0 : i32
    %c0_i32_0 = arith.constant 0 : i32
    %c0_i32_1 = arith.constant 0 : i32
    return %c0_i32, %c0_i32_0 : i32, i32
  }
  func.func @transform_5(%arg0: i32, %arg1: i32) -> (i32, i32) {
    %c0_i32 = arith.constant 0 : i32
    %c0_i32_0 = arith.constant 0 : i32
    return %arg0, %c0_i32 : i32, i32
  }
}

</mosaic_0001>

<bundles_post_ra>
// kernel: _ffn_call.1
= control target key start
LH: loop header
LB: loop body
LE: loop exit
PB: predicated region body
PF: predicated region fallthrough
CT: control target
= control target key end

     0   :  { %10 = vsyncpa [#allocation4], 0  ;;  %s487_s0 = inlined_call_operand.vmem [shape: f32[16,128], index: 0, kind: input, shape index: {}]   ;;  %s488_s1 = inlined_call_operand.hbm [shape: f32[128,128], index: 1, kind: input, shape index: {}]   ;;  %s489_s2 = inlined_call_operand.vmem [shape: f32[1,128], index: 2, kind: input, shape index: {}]   ;;  %s490_s3 = inlined_call_operand.hbm [shape: f32[128,128], index: 3, kind: input, shape index: {}]   ;;  %s491_s4 = inlined_call_operand.vmem [shape: f32[1,128], index: 4, kind: input, shape index: {}]   ;;  %s492_s5 = inlined_call_operand.vmem [shape: f32[16,128], index: 5, kind: output, shape index: {}]  }
   0x1   :  { %11 = vsyncpa [#allocation6], 0  ;;  %s429_s18 = smov [#allocation3]  }
   0x2   :  { %s19_s19 = sshll.u32 %s429_s18, 4  ;;  %s20_s19 = int_to_ptr.vmem [resolvable:$true] %s19_s19 }
   0x3   :  { %s393_s20 = scalar_lea.vmem %s20_s19, 2048  ;;  %p398_p1 = scmp.lt.s32.totalorder %s20_s19, %s20_s19 }
   0x4   :  { %p394_p0 = scmp.ne.s32.totalorder %s20_s19, %s393_s20  ;;  %p399_p2 = scmp.lt.s32.totalorder %s393_s20, %s393_s20 }
   0x6   :  { %p400_p3 = por %p399_p2, %p398_p1 }
   0x8   :  { %p401_p4 = pnand %p400_p3, %p394_p0 }
   0xa   :  { %404 = shalt.err (!%p401_p4)
}
   0xb   :  { %s430_s21 = smov 128   ;;  %s431_s22 = smov 8  }
   0xc   :  { %25 = dma.hbm_to_vmem [thread:$0]  %s488_s1, 2048, %s20_s19, [#allocation4], %s430_s21, %s430_s21, %s431_s22  }
   0xd   :  { %s432_s25 = smov [#allocation5]  }
   0xe   :  { %s33_s26 = sshll.u32 %s432_s25, 4  ;;  %s34_s26 = int_to_ptr.vmem [resolvable:$true] %s33_s26 }
   0xf   :  { %s413_s27 = scalar_lea.vmem %s34_s26, 2048  ;;  %p418_p6 = scmp.lt.s32.totalorder %s34_s26, %s34_s26 }
  0x10   :  { %p414_p5 = scmp.ne.s32.totalorder %s34_s26, %s413_s27  ;;  %p419_p7 = scmp.lt.s32.totalorder %s413_s27, %s413_s27 }
  0x12   :  { %p420_p8 = por %p419_p7, %p418_p6 }
  0x14   :  { %p421_p9 = pnand %p420_p8, %p414_p5 }
  0x16   :  { %424 = shalt.err (!%p421_p9)
}
  0x17   :  { %39 = dma.hbm_to_vmem [thread:$0]  %s490_s3, 2048, %s34_s26, [#allocation6], %s430_s21, %s430_s21, %s431_s22  }
  0x18   :  { %425 = dma.done.wait [#allocation4], 2048  }
  0x19   :  { %426 = vsyncadd [#allocation4], 4294965248 }
  0x1a   :  { %427 = dma.done.wait [#allocation6], 2048  }
  0x1b   :  { %428 = vsyncadd [#allocation6], 4294965248  ;;  %v78_v0 = vld [vmem:[#allocation3 + $0x78] sm:$0xff]  ;;  %v77_v1 = vld [vmem:[#allocation3 + $0x70] sm:$0xff] }
  0x1c   :  { %311 = vmatprep.subr.mxu0 %v78_v0  ;;  %v76_v2 = vld [vmem:[#allocation3 + $0x68] sm:$0xff]  ;;  %v75_v3 = vld [vmem:[#allocation3 + $0x60] sm:$0xff]  ;;  %v74_v5 = vld [vmem:[#allocation3 + $0x58] sm:$0xff] }
  0x1d   :  { %312 = vmatpush3.msra.mxu0 %v78_v0  ;;  %v61_v4 = vld [vmem:[%s487_s0] sm:$0xff]  ;;  %v180_v6 = vld [vmem:[#allocation5 + $0x78] sm:$0xff]  ;;  %v179_v7 = vld [vmem:[#allocation5 + $0x70] sm:$0xff] }
  0x1e   :  { %313 = vmatprep.subr.mxu0 %v77_v1  ;;  %343 = vmatprep.mubr.f32.mxu0 %v61_v4  ;;  %v73_v8 = vld [vmem:[#allocation3 + $0x50] sm:$0xff]  ;;  %v178_v9 = vld [vmem:[#allocation5 + $0x68] sm:$0xff]  ;;  %v177_v11 = vld [vmem:[#allocation5 + $0x60] sm:$0xff] }
  0x1f   :  { %314 = vmatpush3.msra.mxu0 %v77_v1  ;;  %346 = vmatprep.subr.mxu1 %v180_v6  ;;  %v72_v10 = vld [vmem:[#allocation3 + $0x48] sm:$0xff]  ;;  %v71_v12 = vld [vmem:[#allocation3 + $0x40] sm:$0xff]  ;;  %v176_v13 = vld [vmem:[#allocation5 + $0x58] sm:$0xff] }
  0x20   :  { %315 = vmatprep.subr.mxu0 %v76_v2  ;;  %347 = vmatpush3.msra.mxu1 %v180_v6  ;;  %v70_v14 = vld [vmem:[#allocation3 + $0x38] sm:$0xff]  ;;  %v175_v15 = vld [vmem:[#allocation5 + $0x50] sm:$0xff]  ;;  %v174_v17 = vld [vmem:[#allocation5 + $0x48] sm:$0xff] }
  0x21   :  { %316 = vmatpush3.msra.mxu0 %v76_v2  ;;  %348 = vmatprep.subr.mxu1 %v179_v7  ;;  %v69_v16 = vld [vmem:[#allocation3 + $0x30] sm:$0xff]  ;;  %v68_v18 = vld [vmem:[#allocation3 + $0x28] sm:$0xff]  ;;  %v173_v19 = vld [vmem:[#allocation5 + $0x40] sm:$0xff] }
  0x22   :  { %317 = vmatprep.subr.mxu0 %v75_v3  ;;  %349 = vmatpush3.msra.mxu1 %v179_v7  ;;  %v67_v20 = vld [vmem:[#allocation3 + $0x20] sm:$0xff]  ;;  %v172_v21 = vld [vmem:[#allocation5 + $0x38] sm:$0xff]  ;;  %v171_v23 = vld [vmem:[#allocation5 + $0x30] sm:$0xff] }
  0x23   :  { %318 = vmatpush3.msra.mxu0 %v75_v3  ;;  %350 = vmatprep.subr.mxu1 %v178_v9  ;;  %v66_v22 = vld [vmem:[#allocation3 + $0x18] sm:$0xff]  ;;  %v65_v24 = vld [vmem:[#allocation3 + $0x10] sm:$0xff]  ;;  %v170_v25 = vld [vmem:[#allocation5 + $0x28] sm:$0xff] }
  0x24   :  { %319 = vmatprep.subr.mxu0 %v74_v5  ;;  %351 = vmatpush3.msra.mxu1 %v178_v9  ;;  %v64_v26 = vld [vmem:[#allocation3 + $0x8] sm:$0xff]  ;;  %v169_v27 = vld [vmem:[#allocation5 + $0x20] sm:$0xff]  ;;  %v168_v30 = vld [vmem:[#allocation5 + $0x18] sm:$0xff] }
  0x25   :  { %320 = vmatpush3.msra.mxu0 %v74_v5  ;;  %352 = vmatprep.subr.mxu1 %v177_v11  ;;  %v63_v28 = vld [vmem:[#allocation3] sm:$0xff]  ;;  %v62_v29 = vld [vmem:[%s487_s0 + $0x8] sm:$0xff]  ;;  %v167_v31 = vld [vmem:[#allocation5 + $0x10] sm:$0xff] }
  0x26   :  { %321 = vmatprep.subr.mxu0 %v73_v8  ;;  %353 = vmatpush3.msra.mxu1 %v177_v11  ;;  %v166_v32 = vld [vmem:[#allocation5 + $0x8] sm:$0xff]  ;;  %v165_v33 = vld [vmem:[#allocation5] sm:$0xff] }
  0x27   :  { %322 = vmatpush3.msra.mxu0 %v73_v8  ;;  %354 = vmatprep.subr.mxu1 %v176_v13  ;;  %v274_v34 = vld [vmem:[%s489_s2] ss:$0 sm:$0xff] }
  0x28   :  { %323 = vmatprep.subr.mxu0 %v72_v10  ;;  %355 = vmatpush3.msra.mxu1 %v176_v13  ;;  %v273_v41 = vld [vmem:[%s491_s4] ss:$0 sm:$0xff] }
  0x29   :  { %324 = vmatpush3.msra.mxu0 %v72_v10  ;;  %356 = vmatprep.subr.mxu1 %v175_v15 }
  0x2a   :  { %325 = vmatprep.subr.mxu0 %v71_v12  ;;  %357 = vmatpush3.msra.mxu1 %v175_v15 }
  0x2b   :  { %326 = vmatpush3.msra.mxu0 %v71_v12  ;;  %358 = vmatprep.subr.mxu1 %v174_v17 }
  0x2c   :  { %327 = vmatprep.subr.mxu0 %v70_v14  ;;  %359 = vmatpush3.msra.mxu1 %v174_v17 }
  0x2d   :  { %328 = vmatpush3.msra.mxu0 %v70_v14  ;;  %360 = vmatprep.subr.mxu1 %v173_v19 }
  0x2e   :  { %329 = vmatprep.subr.mxu0 %v69_v16  ;;  %361 = vmatpush3.msra.mxu1 %v173_v19 }
  0x2f   :  { %330 = vmatpush3.msra.mxu0 %v69_v16  ;;  %362 = vmatprep.subr.mxu1 %v172_v21 }
  0x30   :  { %331 = vmatprep.subr.mxu0 %v68_v18  ;;  %363 = vmatpush3.msra.mxu1 %v172_v21 }
  0x31   :  { %332 = vmatpush3.msra.mxu0 %v68_v18  ;;  %364 = vmatprep.subr.mxu1 %v171_v23 }
  0x32   :  { %333 = vmatprep.subr.mxu0 %v67_v20  ;;  %365 = vmatpush3.msra.mxu1 %v171_v23 }
  0x33   :  { %334 = vmatpush3.msra.mxu0 %v67_v20  ;;  %366 = vmatprep.subr.mxu1 %v170_v25 }
  0x34   :  { %335 = vmatprep.subr.mxu0 %v66_v22  ;;  %367 = vmatpush3.msra.mxu1 %v170_v25 }
  0x35   :  { %336 = vmatpush3.msra.mxu0 %v66_v22  ;;  %368 = vmatprep.subr.mxu1 %v169_v27 }
  0x36   :  { %337 = vmatprep.subr.mxu0 %v65_v24  ;;  %369 = vmatpush3.msra.mxu1 %v169_v27 }
  0x37   :  { %338 = vmatpush3.msra.mxu0 %v65_v24  ;;  %370 = vmatprep.subr.mxu1 %v168_v30 }
  0x38   :  { %339 = vmatprep.subr.mxu0 %v64_v26  ;;  %371 = vmatpush3.msra.mxu1 %v168_v30 }
  0x39   :  { %340 = vmatpush3.msra.mxu0 %v64_v26  ;;  %372 = vmatprep.subr.mxu1 %v167_v31 }
  0x3a   :  { %341 = vmatprep.subr.mxu0 %v63_v28  ;;  %373 = vmatpush3.msra.mxu1 %v167_v31 }
  0x3b   :  { %342 = vmatpush3.msra.mxu0 %v63_v28  ;;  %374 = vmatprep.subr.mxu1 %v166_v32 }
  0x3c   :  { %344 = vmatmul.mubr.f32.vlgmr.msra.gmra.mxu0 %v62_v29  ;;  %375 = vmatpush3.msra.mxu1 %v166_v32 }
  0x3d   :  { %376 = vmatprep.subr.mxu1 %v165_v33 }
  0x3e   :  { %377 = vmatpush3.msra.mxu1 %v165_v33 }
  0xfc   :  { %v345_v35 = vpop.f32.mrf.mxu0 }
  0xfd   :  { %v158_v36 = vadd.f32 %v345_v35, %v274_v34 }
  0xfe   :  { %v152_v37 = vpop.f32.mrf.mxu0 }
  0xff   :  { %v153_v38 = vadd.f32 %v274_v34, %v152_v37  ;;  %v162_v40 = vmax.f32 %v158_v36, 0.0 }
 0x101   :  { %v161_v39 = vmax.f32 %v153_v38, 0.0 }
 0x103   :  { %378 = vmatprep.mubr.f32.mxu1 %v161_v39 }
 0x104   :  { %379 = vmatmul.mubr.f32.vlgmr.msra.gmra.mxu1 %v162_v40 }
 0x1c4   :  { %v380_v42 = vpop.f32.mrf.mxu1 }
 0x1c5   :  { %v257_v43 = vadd.f32 %v380_v42, %v273_v41 }
 0x1c6   :  { %v247_v44 = vpop.f32.mrf.mxu1 }
 0x1c7   :  { %266 = vst [vmem:[%s492_s5 + $0x8] sm:$0xff] %v257_v43  ;;  %v256_v45 = vadd.f32 %v273_v41, %v247_v44 }
 0x1c9   :  { %265 = vst [vmem:[%s492_s5] sm:$0xff] %v256_v45 }
 0x1ca   :  { %271 = vsyncpa [#allocation4], 1 }
 0x1cb   :  { %272 = vsyncpa [#allocation6], 1 }

</bundles_post_ra>
